<compile_context>
chip_gen: v5e
topology: v5e:2x2
jax: 0.10.0
libtpu: 0.0.40
codegen_flags: <defaults>
</compile_context>

<pallas_src>
import jax
import jax.numpy as jnp
from jax.experimental import pallas as pl
from jax.experimental.pallas import tpu as pltpu

_LANES = 128
_SUBLANES = 8


def _round_up(x, m):
    return -(-x // m) * m


def critic_kernel(x_ref, w1_ref, b1_ref, w2_ref, b2_ref,
                  w3_ref, b3_ref, w4_ref, b4_ref, o_ref):
    # Activations in bf16 for the MXU, f32 accumulation, bias/ReLU in f32.
    x = x_ref[...].astype(jnp.bfloat16)                                   # (TB, H)

    h = jnp.dot(x, w1_ref[...], preferred_element_type=jnp.float32) + b1_ref[...]
    h = jnp.maximum(h, 0.0)
    h = jnp.dot(h.astype(jnp.bfloat16), w2_ref[...],
                preferred_element_type=jnp.float32) + b2_ref[...]
    h = jnp.maximum(h, 0.0)
    h = jnp.dot(h.astype(jnp.bfloat16), w3_ref[...],
                preferred_element_type=jnp.float32) + b3_ref[...]
    h = jnp.maximum(h, 0.0)                                               # (TB, P3)

    # Final Linear(H/16, 1): an N=1 MXU matmul wastes the MXU; use a VPU
    # multiply + XLU cross-lane reduce.  Padded lanes are zero -> contribute 0.
    out = jnp.sum(h * w4_ref[...], axis=-1, keepdims=True) + b4_ref[...]  # (TB, 1)
    o_ref[...] = out.astype(o_ref.dtype)


def _pad_params(params, H):
    """Zero-pad weight matrices to 128-lane multiples (mathematically exact)."""
    p1 = _round_up(H // 2, _LANES)
    p2 = _round_up(H // 4, _LANES)
    p3 = _round_up(H // 16, _LANES)

    def pad2d(a, rows, cols):
        return jnp.pad(a, ((0, rows - a.shape[0]), (0, cols - a.shape[1])))

    w1 = pad2d(params["w1"], H, p1)
    b1 = pad2d(params["b1"], 1, p1)
    w2 = pad2d(params["w2"], p1, p2)
    b2 = pad2d(params["b2"], 1, p2)
    w3 = pad2d(params["w3"], p2, p3)
    b3 = pad2d(params["b3"], 1, p3)
    w4 = pad2d(params["w4"], 1, p3)
    b4 = params["b4"]
    return (w1, b1, w2, b2, w3, b3, w4, b4), (p1, p2, p3)


def critic_forward(last_hidden_state, params, *, block_batch=512):
    """last_hidden_state: [B, S, H] float32.  Returns logits [B, 1] float32."""
    B, S, H = last_hidden_state.shape

    # View the hidden state as [B, S*H] (free bitcast reshape under jit); the
    # input BlockSpec then DMAs only columns [0, H) of each row tile = the
    # CLS rows, without ever materializing a CLS copy in HBM.
    if H % _LANES == 0:
        x2d = last_hidden_state.reshape(B, S * H)
    else:
        # Fallback for unaligned H: materialize CLS in bf16 (half the DMA bytes).
        x2d = last_hidden_state[:, 0, :].astype(jnp.bfloat16)

    (w1, b1, w2, b2, w3, b3, w4, b4), (p1, p2, p3) = _pad_params(params, H)

    # Batch tile: multiple of 8 sublanes.  If a single tile would cover the
    # whole (large) batch, split into >= 2 grid steps so the "parallel" axis
    # can shard across v7x's two TensorCores.
    tb = _round_up(min(block_batch, _round_up(B, _SUBLANES)), _SUBLANES)
    num_blocks = pl.cdiv(B, tb)
    if num_blocks == 1 and B > 2 * _LANES:
        tb = _round_up(pl.cdiv(B, 2), _LANES)
        num_blocks = pl.cdiv(B, tb)

    # VMEM budget: double-buffered input tiles + resident (double-buffered)
    # weights + f32/bf16 activation temporaries + lane-padded output tiles,
    # with ~50% headroom.
    param_bytes = sum(int(p.size) * p.dtype.itemsize
                      for p in (w1, b1, w2, b2, w3, b3, w4, b4))
    in_bytes = 2 * tb * H * x2d.dtype.itemsize
    out_bytes = 2 * tb * _LANES * 4               # (tb, 1) pads to 128 lanes in VMEM
    act_bytes = tb * (p1 + p2 + p3) * (4 + 2)     # f32 activations + bf16 copies
    vmem_limit = int((2 * param_bytes + in_bytes + out_bytes + act_bytes) * 1.5)
    vmem_limit = min(max(vmem_limit, 24 << 20), 64 << 20)

    def resident(arr):
        # Constant index_map -> block stays resident in VMEM across grid steps.
        return pl.BlockSpec(arr.shape, lambda i: (0, 0))

    # Rows beyond B in the last (partial) tile read unspecified padding and
    # produce garbage logits; their writes land in the padded output rows,
    # which are sliced off below.
    out_padded = pl.pallas_call(
        critic_kernel,
        out_shape=jax.ShapeDtypeStruct((num_blocks * tb, 1), jnp.float32),
        grid=(num_blocks,),
        in_specs=[
            pl.BlockSpec((tb, H), lambda i: (i, 0)),   # CLS rows of batch tile i
            resident(w1), resident(b1),
            resident(w2), resident(b2),
            resident(w3), resident(b3),
            resident(w4), resident(b4),
        ],
        out_specs=pl.BlockSpec((tb, 1), lambda i: (i, 0)),
        compiler_params=pltpu.CompilerParams(
            dimension_semantics=("parallel",),
            vmem_limit_bytes=vmem_limit),
    )(x2d, w1, b1, w2, b2, w3, b3, w4, b4)

    return out_padded[:B]


def init_params(key, hidden_size):
    """Deterministic synthetic init (uniform, torch-Linear-like fan_in scaling).

    Weight layout: [in_features, out_features]; w1..w3 stored in bf16 for the
    MXU, final layer stored as a (1, H//16) f32 row for the VPU/XLU reduction.
    """
    dims = [hidden_size, hidden_size // 2, hidden_size // 4,
            hidden_size // 16, 1]
    params = {}
    for i in range(4):
        fan_in, fan_out = dims[i], dims[i + 1]
        key, kw, kb = jax.random.split(key, 3)
        bound = 1.0 / (fan_in ** 0.5)
        w = jax.random.uniform(kw, (fan_in, fan_out), jnp.float32, -bound, bound)
        b = jax.random.uniform(kb, (1, fan_out), jnp.float32, -bound, bound)
        if i < 3:
            params[f"w{i+1}"] = w.astype(jnp.bfloat16)
        else:
            params["w4"] = w.reshape(1, fan_in)   # (H//16, 1) column -> row layout
        params[f"b{i+1}"] = b
    return params


def critic_reference(last_hidden_state, params):
    """Plain-JAX reference with the same mixed-precision policy as the kernel
    (uses the unpadded logical weights, so it also checks that the lane
    zero-padding inside critic_forward is a no-op)."""
    f32, bf16 = jnp.float32, jnp.bfloat16
    h = last_hidden_state[:, 0, :]
    h = jnp.maximum(h.astype(bf16).astype(f32) @ params["w1"].astype(f32)
                    + params["b1"], 0.0)
    h = jnp.maximum(h.astype(bf16).astype(f32) @ params["w2"].astype(f32)
                    + params["b2"], 0.0)
    h = jnp.maximum(h.astype(bf16).astype(f32) @ params["w3"].astype(f32)
                    + params["b3"], 0.0)
    return jnp.sum(h * params["w4"], axis=-1, keepdims=True) + params["b4"]


if __name__ == "__main__":
    B, S, H = 2, 8, 128  # small shapes; H=128 keeps H//16 = 8 integral

    key = jax.random.PRNGKey(0)
    key, kx = jax.random.split(key)
    last_hidden_state = jax.random.normal(kx, (B, S, H), jnp.float32)
    params = init_params(key, H)

    critic = jax.jit(critic_forward)
    logits = jax.block_until_ready(critic(last_hidden_state, params))
    ref = jax.block_until_ready(critic_reference(last_hidden_state, params))

    assert logits.shape == (B, 1), logits.shape
    assert jnp.allclose(logits, ref, atol=2e-3, rtol=2e-3), (logits, ref)

    print("KERNEL_OK")
</pallas_src>

<mosaic_0001>
module attributes {stable_mosaic.version = 11 : i64} {
  func.func @critic_kernel(%arg0: i32, %arg1: memref<8x128xf32, #tpu.memory_space<vmem>>, %arg2: memref<128x128xbf16, #tpu.memory_space<vmem>>, %arg3: memref<1x128xf32, #tpu.memory_space<vmem>>, %arg4: memref<128x128xbf16, #tpu.memory_space<vmem>>, %arg5: memref<1x128xf32, #tpu.memory_space<vmem>>, %arg6: memref<128x128xbf16, #tpu.memory_space<vmem>>, %arg7: memref<1x128xf32, #tpu.memory_space<vmem>>, %arg8: memref<1x128xf32, #tpu.memory_space<vmem>>, %arg9: memref<1x1xf32, #tpu.memory_space<vmem>>, %arg10: memref<8x1xf32, #tpu.memory_space<vmem>>) attributes {dimension_semantics = [#tpu.dimension_semantics<parallel>], iteration_bounds = array<i64: 1>, scalar_prefetch = 0 : i64, scratch_operands = 0 : i64, tpu.core_type = #tpu.core_type<tc>, window_params = [{transform_indices = @transform_0, window_bounds = array<i64: 8, 128>}, {pipeline_mode = #tpu.pipeline_mode<synchronous>, transform_indices = @transform_1, window_bounds = array<i64: 128, 128>}, {pipeline_mode = #tpu.pipeline_mode<synchronous>, transform_indices = @transform_2, window_bounds = array<i64: 1, 128>}, {pipeline_mode = #tpu.pipeline_mode<synchronous>, transform_indices = @transform_3, window_bounds = array<i64: 128, 128>}, {pipeline_mode = #tpu.pipeline_mode<synchronous>, transform_indices = @transform_4, window_bounds = array<i64: 1, 128>}, {pipeline_mode = #tpu.pipeline_mode<synchronous>, transform_indices = @transform_5, window_bounds = array<i64: 128, 128>}, {pipeline_mode = #tpu.pipeline_mode<synchronous>, transform_indices = @transform_6, window_bounds = array<i64: 1, 128>}, {pipeline_mode = #tpu.pipeline_mode<synchronous>, transform_indices = @transform_7, window_bounds = array<i64: 1, 128>}, {pipeline_mode = #tpu.pipeline_mode<synchronous>, transform_indices = @transform_8, window_bounds = array<i64: 1, 1>}, {transform_indices = @transform_9, window_bounds = array<i64: 8, 1>}]} {
    %c0 = arith.constant 0 : index
    %c0_0 = arith.constant 0 : index
    %0 = vector.load %arg1[%c0, %c0_0] : memref<8x128xf32, #tpu.memory_space<vmem>>, vector<8x128xf32>
    %1 = arith.truncf %0 : vector<8x128xf32> to vector<8x128xbf16>
    %c0_1 = arith.constant 0 : index
    %c0_2 = arith.constant 0 : index
    %2 = vector.load %arg2[%c0_1, %c0_2] : memref<128x128xbf16, #tpu.memory_space<vmem>>, vector<128x128xbf16>
    %cst = arith.constant dense<0.000000e+00> : vector<8x128xf32>
    %3 = tpu.matmul %1, %2, %cst {dimension_numbers = #tpu.dot_dimension_numbers<[1], [0], [0], [1], [0, 0, 1, 1], [], []>} : vector<8x128xbf16>, vector<128x128xbf16>, vector<8x128xf32> -> vector<8x128xf32>
    %c0_3 = arith.constant 0 : index
    %c0_4 = arith.constant 0 : index
    %4 = vector.load %arg3[%c0_3, %c0_4] : memref<1x128xf32, #tpu.memory_space<vmem>>, vector<1x128xf32>
    %5 = vector.broadcast %4 : vector<1x128xf32> to vector<8x128xf32>
    %6 = arith.addf %3, %5 : vector<8x128xf32>
    %cst_5 = arith.constant 0.000000e+00 : f32
    %7 = vector.broadcast %cst_5 : f32 to vector<8x128xf32>
    %8 = arith.maximumf %6, %7 : vector<8x128xf32>
    %9 = arith.truncf %8 : vector<8x128xf32> to vector<8x128xbf16>
    %c0_6 = arith.constant 0 : index
    %c0_7 = arith.constant 0 : index
    %10 = vector.load %arg4[%c0_6, %c0_7] : memref<128x128xbf16, #tpu.memory_space<vmem>>, vector<128x128xbf16>
    %cst_8 = arith.constant dense<0.000000e+00> : vector<8x128xf32>
    %11 = tpu.matmul %9, %10, %cst_8 {dimension_numbers = #tpu.dot_dimension_numbers<[1], [0], [0], [1], [0, 0, 1, 1], [], []>} : vector<8x128xbf16>, vector<128x128xbf16>, vector<8x128xf32> -> vector<8x128xf32>
    %c0_9 = arith.constant 0 : index
    %c0_10 = arith.constant 0 : index
    %12 = vector.load %arg5[%c0_9, %c0_10] : memref<1x128xf32, #tpu.memory_space<vmem>>, vector<1x128xf32>
    %13 = vector.broadcast %12 : vector<1x128xf32> to vector<8x128xf32>
    %14 = arith.addf %11, %13 : vector<8x128xf32>
    %cst_11 = arith.constant 0.000000e+00 : f32
    %15 = vector.broadcast %cst_11 : f32 to vector<8x128xf32>
    %16 = arith.maximumf %14, %15 : vector<8x128xf32>
    %17 = arith.truncf %16 : vector<8x128xf32> to vector<8x128xbf16>
    %c0_12 = arith.constant 0 : index
    %c0_13 = arith.constant 0 : index
    %18 = vector.load %arg6[%c0_12, %c0_13] : memref<128x128xbf16, #tpu.memory_space<vmem>>, vector<128x128xbf16>
    %cst_14 = arith.constant dense<0.000000e+00> : vector<8x128xf32>
    %19 = tpu.matmul %17, %18, %cst_14 {dimension_numbers = #tpu.dot_dimension_numbers<[1], [0], [0], [1], [0, 0, 1, 1], [], []>} : vector<8x128xbf16>, vector<128x128xbf16>, vector<8x128xf32> -> vector<8x128xf32>
    %c0_15 = arith.constant 0 : index
    %c0_16 = arith.constant 0 : index
    %20 = vector.load %arg7[%c0_15, %c0_16] : memref<1x128xf32, #tpu.memory_space<vmem>>, vector<1x128xf32>
    %21 = vector.broadcast %20 : vector<1x128xf32> to vector<8x128xf32>
    %22 = arith.addf %19, %21 : vector<8x128xf32>
    %cst_17 = arith.constant 0.000000e+00 : f32
    %23 = vector.broadcast %cst_17 : f32 to vector<8x128xf32>
    %24 = arith.maximumf %22, %23 : vector<8x128xf32>
    %c0_18 = arith.constant 0 : index
    %c0_19 = arith.constant 0 : index
    %25 = vector.load %arg8[%c0_18, %c0_19] : memref<1x128xf32, #tpu.memory_space<vmem>>, vector<1x128xf32>
    %26 = vector.broadcast %25 : vector<1x128xf32> to vector<8x128xf32>
    %27 = arith.mulf %24, %26 : vector<8x128xf32>
    %cst_20 = arith.constant dense<0.000000e+00> : vector<8xf32>
    %28 = vector.multi_reduction <add>, %27, %cst_20 [1] : vector<8x128xf32> to vector<8xf32>
    %29 = vector.shape_cast %28 : vector<8xf32> to vector<8x1xf32>
    %c0_21 = arith.constant 0 : index
    %c0_22 = arith.constant 0 : index
    %30 = vector.load %arg9[%c0_21, %c0_22] : memref<1x1xf32, #tpu.memory_space<vmem>>, vector<1x1xf32>
    %31 = vector.broadcast %30 : vector<1x1xf32> to vector<8x1xf32>
    %32 = arith.addf %29, %31 : vector<8x1xf32>
    %c0_23 = arith.constant 0 : index
    %c0_24 = arith.constant 0 : index
    %33 = vector.load %arg10[%c0_23, %c0_24] : memref<8x1xf32, #tpu.memory_space<vmem>>, vector<8x1xf32>
    tpu.vector_store %arg10[%c0_23, %c0_24], %32 {strides = array<i32>} : memref<8x1xf32, #tpu.memory_space<vmem>>, vector<8x1xf32>,
    return
  }
  func.func @transform_0(%arg0: i32) -> (i32, i32) {
    %c0_i32 = arith.constant 0 : i32
    %c0_i32_0 = arith.constant 0 : i32
    return %arg0, %c0_i32 : i32, i32
  }
  func.func @transform_1(%arg0: i32) -> (i32, i32) {
    %c0_i32 = arith.constant 0 : i32
    %c0_i32_0 = arith.constant 0 : i32
    %c0_i32_1 = arith.constant 0 : i32
    return %c0_i32, %c0_i32_0 : i32, i32
  }
  func.func @transform_2(%arg0: i32) -> (i32, i32) {
    %c0_i32 = arith.constant 0 : i32
    %c0_i32_0 = arith.constant 0 : i32
    %c0_i32_1 = arith.constant 0 : i32
    return %c0_i32, %c0_i32_0 : i32, i32
  }
  func.func @transform_3(%arg0: i32) -> (i32, i32) {
    %c0_i32 = arith.constant 0 : i32
    %c0_i32_0 = arith.constant 0 : i32
    %c0_i32_1 = arith.constant 0 : i32
    return %c0_i32, %c0_i32_0 : i32, i32
  }
  func.func @transform_4(%arg0: i32) -> (i32, i32) {
    %c0_i32 = arith.constant 0 : i32
    %c0_i32_0 = arith.constant 0 : i32
    %c0_i32_1 = arith.constant 0 : i32
    return %c0_i32, %c0_i32_0 : i32, i32
  }
  func.func @transform_5(%arg0: i32) -> (i32, i32) {
    %c0_i32 = arith.constant 0 : i32
    %c0_i32_0 = arith.constant 0 : i32
    %c0_i32_1 = arith.constant 0 : i32
    return %c0_i32, %c0_i32_0 : i32, i32
  }
  func.func @transform_6(%arg0: i32) -> (i32, i32) {
    %c0_i32 = arith.constant 0 : i32
    %c0_i32_0 = arith.constant 0 : i32
    %c0_i32_1 = arith.constant 0 : i32
    return %c0_i32, %c0_i32_0 : i32, i32
  }
  func.func @transform_7(%arg0: i32) -> (i32, i32) {
    %c0_i32 = arith.constant 0 : i32
    %c0_i32_0 = arith.constant 0 : i32
    %c0_i32_1 = arith.constant 0 : i32
    return %c0_i32, %c0_i32_0 : i32, i32
  }
  func.func @transform_8(%arg0: i32) -> (i32, i32) {
    %c0_i32 = arith.constant 0 : i32
    %c0_i32_0 = arith.constant 0 : i32
    %c0_i32_1 = arith.constant 0 : i32
    return %c0_i32, %c0_i32_0 : i32, i32
  }
  func.func @transform_9(%arg0: i32) -> (i32, i32) {
    %c0_i32 = arith.constant 0 : i32
    %c0_i32_0 = arith.constant 0 : i32
    return %arg0, %c0_i32 : i32, i32
  }
}

</mosaic_0001>

<bundles_post_ra>
// kernel: critic_forward.1
= control target key start
LH: loop header
LB: loop body
LE: loop exit
PB: predicated region body
PF: predicated region fallthrough
CT: control target
= control target key end

     0   :  { %s609_s0 = inlined_call_operand.vmem [shape: f32[2,1024], index: 0, kind: input, shape index: {}]   ;;  %s610_s1 = inlined_call_operand.vmem [shape: bf16[128,128], index: 1, kind: input, shape index: {}]   ;;  %s611_s2 = inlined_call_operand.vmem [shape: f32[1,128], index: 2, kind: input, shape index: {}]   ;;  %s612_s3 = inlined_call_operand.vmem [shape: bf16[128,128], index: 3, kind: input, shape index: {}]   ;;  %s613_s4 = inlined_call_operand.vmem [shape: f32[1,128], index: 4, kind: input, shape index: {}]   ;;  %s614_s5 = inlined_call_operand.vmem [shape: bf16[128,128], index: 5, kind: input, shape index: {}]   ;;  %s615_s6 = inlined_call_operand.vmem [shape: f32[1,128], index: 6, kind: input, shape index: {}]   ;;  %s616_s7 = inlined_call_operand.vmem [shape: f32[1,128], index: 7, kind: input, shape index: {}]   ;;  %s617_s8 = inlined_call_operand.<no memory space> [shape: f32[1,1], index: 8, kind: input, shape index: {}]   ;;  %s618_s9 = inlined_call_operand.vmem [shape: f32[8,1], index: 9, kind: output, shape index: {}]  }
   0x1   :  { %v14_v0 = vstv %s617_s8 }
   0x2   :  { %15 = vst [vmem:[#allocation2] sm:$0x1] %v14_v0 }
   0x3   :  { %v444_v1 = vld [vmem:[%s610_s1 + $0x38] sm:$0xff]  ;;  %v443_v2 = vld [vmem:[%s610_s1 + $0x30] sm:$0xff]  ;;  %v34_v3 = vld [vmem:[%s609_s0] sm:$0x3]  ;;  %vm331_vm0 = vcmask 7168  }
   0x4   :  { %139 = vmatpush.bf16.msra.mxu0 %v444_v1  ;;  %35 = vst [vmem:[#allocation3] sm:$0x3] %v34_v3  ;;  %v452_v4 = vld [vmem:[%s612_s3 + $0x38] sm:$0xff]  ;;  %v442_v5 = vld [vmem:[%s610_s1 + $0x28] sm:$0xff]  ;;  %v451_v6 = vld [vmem:[%s612_s3 + $0x30] sm:$0xff] }
   0x5   :  { %222 = vmatpush.bf16.msra.mxu1 %v452_v4  ;;  %v450_v7 = vld [vmem:[%s612_s3 + $0x28] sm:$0xff]  ;;  %v441_v8 = vld [vmem:[%s610_s1 + $0x20] sm:$0xff]  ;;  %v440_v10 = vld [vmem:[%s610_s1 + $0x18] sm:$0xff] }
   0x6   :  { %v449_v9 = vld [vmem:[%s612_s3 + $0x20] sm:$0xff]  ;;  %v448_v11 = vld [vmem:[%s612_s3 + $0x18] sm:$0xff]  ;;  %v439_v12 = vld [vmem:[%s610_s1 + $0x10] sm:$0xff] }
   0x7   :  { %v447_v13 = vld [vmem:[%s612_s3 + $0x10] sm:$0xff]  ;;  %v438_v14 = vld [vmem:[%s610_s1 + $0x8] sm:$0xff]  ;;  %v437_v15 = vld [vmem:[%s610_s1] sm:$0xff] }
   0x8   :  { %140 = vmatpush.bf16.msra.mxu0 %v443_v2  ;;  %v446_v18 = vld [vmem:[%s612_s3 + $0x8] sm:$0xff]  ;;  %v445_v19 = vld [vmem:[%s612_s3] sm:$0xff]  ;;  %v460_v20 = vld [vmem:[%s614_s5 + $0x38] sm:$0xff] }
   0x9   :  { %223 = vmatpush.bf16.msra.mxu1 %v451_v6  ;;  %305 = vmatpush.bf16.msra.mxu2 %v460_v20  ;;  %v459_v21 = vld [vmem:[%s614_s5 + $0x30] sm:$0xff]  ;;  %v458_v22 = vld [vmem:[%s614_s5 + $0x28] sm:$0xff]  ;;  %v457_v23 = vld [vmem:[%s614_s5 + $0x20] sm:$0xff] }
   0xa   :  { %v456_v24 = vld [vmem:[%s614_s5 + $0x18] sm:$0xff]  ;;  %v455_v25 = vld [vmem:[%s614_s5 + $0x10] sm:$0xff]  ;;  %v461_v26 = vld [vmem:[%s611_s2] ss:$0 sm:$0xff] }
   0xb   :  { %v69_v16 = vld [vmem:[#allocation3] sm:$0xff]  ;;  %v462_v34 = vld [vmem:[%s613_s4] ss:$0 sm:$0xff] }
   0xc   :  { %141 = vmatpush.bf16.msra.mxu0 %v442_v5  ;;  %v70_v17 = vpack.c.bf16 %v69_v16, %v69_v16  ;;  %v454_v32 = vld [vmem:[%s614_s5 + $0x8] sm:$0xff]  ;;  %v453_v33 = vld [vmem:[%s614_s5] sm:$0xff] }
   0xd   :  { %224 = vmatpush.bf16.msra.mxu1 %v450_v7  ;;  %306 = vmatpush.bf16.msra.mxu2 %v459_v21  ;;  %v463_v40 = vld [vmem:[%s615_s6] ss:$0 sm:$0xff] }
   0xe   :  { %v464_v43 = vld [vmem:[%s616_s7] ss:$0 sm:$0xff] }
   0xf   :  { %v465_v47 = vld [vmem:[#allocation2] ss:$0 sm:$0xff] }
  0x10   :  { %142 = vmatpush.bf16.msra.mxu0 %v441_v8 }
  0x11   :  { %225 = vmatpush.bf16.msra.mxu1 %v449_v9  ;;  %307 = vmatpush.bf16.msra.mxu2 %v458_v22 }
  0x14   :  { %143 = vmatpush.bf16.msra.mxu0 %v440_v10 }
  0x15   :  { %226 = vmatpush.bf16.msra.mxu1 %v448_v11  ;;  %308 = vmatpush.bf16.msra.mxu2 %v457_v23 }
  0x18   :  { %144 = vmatpush.bf16.msra.mxu0 %v439_v12 }
  0x19   :  { %227 = vmatpush.bf16.msra.mxu1 %v447_v13  ;;  %309 = vmatpush.bf16.msra.mxu2 %v456_v24 }
  0x1c   :  { %145 = vmatpush.bf16.msra.mxu0 %v438_v14 }
  0x1d   :  { %228 = vmatpush.bf16.msra.mxu1 %v446_v18  ;;  %310 = vmatpush.bf16.msra.mxu2 %v455_v25 }
  0x20   :  { %146 = vmatpush.bf16.msra.mxu0 %v437_v15 }
  0x21   :  { %229 = vmatpush.bf16.msra.mxu1 %v445_v19  ;;  %311 = vmatpush.bf16.msra.mxu2 %v454_v32 }
  0x23   :  { %147 = vmatmul.bf16.vlgmr.msra.gmra.mxu0 %v70_v17 }
  0x25   :  { %312 = vmatpush.bf16.msra.mxu2 %v453_v33 }
  0xa0   :  { %v148_v27 = vpop.f32.mrf.mxu0 }
  0xa1   :  { %v149_v28 = vadd.f32 %v461_v26, %v148_v27 }
  0xa3   :  { %v152_v29 = vmax.f32 %v149_v28, 0.0 }
  0xa5   :  { %v153_v30 = vpack.c.bf16 %v152_v29, %v152_v29 }
  0xa7   :  { %230 = vmatmul.bf16.vlgmr.msra.gmra.mxu1 %v153_v30 }
  0xa8   :  { %v150_v31 = vpop.f32.mrf.mxu0 }
 0x124   :  { %v231_v35 = vpop.f32.mrf.mxu1 }
 0x125   :  { %v232_v36 = vadd.f32 %v462_v34, %v231_v35 }
 0x127   :  { %v235_v37 = vmax.f32 %v232_v36, 0.0 }
 0x129   :  { %v236_v38 = vpack.c.bf16 %v235_v37, %v235_v37 }
 0x12b   :  { %313 = vmatmul.bf16.vlgmr.msra.gmra.mxu2 %v236_v38 }
 0x12c   :  { %v233_v39 = vpop.f32.mrf.mxu1 }
 0x1ae   :  { %v314_v41 = vpop.f32.mrf.mxu2 }
 0x1af   :  { %v315_v42 = vadd.f32 %v463_v40, %v314_v41 }
 0x1b1   :  { %v318_v44 = vmax.f32 %v315_v42, 0.0 }
 0x1b3   :  { %v323_v45 = vmul.f32 %v464_v43, %v318_v44 }
 0x1b5   :  { %324 = vadd.xlane.f32.xlu0 %v323_v45 }
 0x1b6   :  { %v316_v46 = vpop.f32.mrf.mxu2 }
 0x228   :  { %v325_v48 = vpop.xlane.xlu0 %324 }
 0x229   :  { %v330_v49 = vadd.f32 %v465_v47, %v325_v48 }
 0x22b   :  { %332 = vst.msk [vmem:[%s618_s9] sm:$0xff] %vm331_vm0, %v330_v49 }

</bundles_post_ra>
